<compile_context>
chip_gen: v6e
topology: v6e:2x2x1
jax: 0.10.0
libtpu: 0.0.40
codegen_flags: <defaults>
</compile_context>

<pallas_src>
import functools

import jax
import jax.numpy as jnp
from jax.experimental import pallas as pl
from jax.experimental.pallas import tpu as pltpu

_VMEM_LIMIT = 48 * 1024 * 1024   # safe on v5e/v6e (128 MiB phys) and v7x (64 MiB)


def _round_up(a, b):
    return (a + b - 1) // b * b


# ----------------------------------------------------------------------------
# Kernel 1: fused Q/K/V projection, head-group-major bf16 output
# ----------------------------------------------------------------------------
def _qkv_proj_kernel(x_ref, w_ref, b_ref, q_ref, k_ref, v_ref, *, gd):
    """Per (batch, T-tile, head-group): one (Tt, C) x (C, 3*gd) bf16 MXU pass."""
    x = x_ref[0]                                                    # (Tt, C) bf16
    y = jnp.dot(x, w_ref[0], preferred_element_type=jnp.float32)    # (Tt, 3gd) f32
    y = y + b_ref[0]                                                # k-bias slice is zero
    q_ref[0, 0] = y[:, :gd].astype(q_ref.dtype)
    k_ref[0, 0] = y[:, gd:2 * gd].astype(k_ref.dtype)
    v_ref[0, 0] = y[:, 2 * gd:].astype(v_ref.dtype)


# ----------------------------------------------------------------------------
# Kernel 2: flash attention (online softmax over KV tiles) fused with out-proj
# ----------------------------------------------------------------------------
def _flash_attn_out_kernel(*refs, head_dim, heads_per_grp, tq, tk, t_valid,
                           t_pad, causal, has_mask, exp_dtype, approx_recip):
    if has_mask:
        (q_ref, k_ref, v_ref, wo_ref, bo_ref, mask_ref,
         o_ref, acc_ref, ctx_ref, m_ref, l_ref) = refs
    else:
        (q_ref, k_ref, v_ref, wo_ref, bo_ref,
         o_ref, acc_ref, ctx_ref, m_ref, l_ref) = refs
        mask_ref = None

    g = pl.program_id(2)
    kv = pl.program_id(3)
    n_g = pl.num_programs(2)
    n_kv = pl.num_programs(3)
    q0 = pl.program_id(1) * tq          # global first query row of this tile
    k0 = kv * tk                        # global first key column of this tile

    # ---- init per-(q-tile, head-group) online-softmax state ----------------
    @pl.when(kv == 0)
    def _():
        m_ref[...] = jnp.full(m_ref.shape, -jnp.inf, dtype=m_ref.dtype)
        l_ref[...] = jnp.zeros_like(l_ref)
        ctx_ref[...] = jnp.zeros_like(ctx_ref)

    @pl.when((kv == 0) & (g == 0))
    def _():
        acc_ref[...] = jnp.zeros_like(acc_ref)

    # ---- one flash step over this KV tile, all heads of the group ----------
    def compute():
        q = q_ref[0, 0]                 # (tq, gd) bf16
        k = k_ref[0, 0]                 # (tk, gd) bf16
        v = v_ref[0, 0]                 # (tk, gd) bf16

        # Additive bias for this (q-tile, kv-tile): built once, shared by all
        # heads of the group (no (T, T) mask DMA on the causal path).
        bias = None
        if causal:
            rows = q0 + jax.lax.broadcasted_iota(jnp.int32, (tq, tk), 0)
            cols = k0 + jax.lax.broadcasted_iota(jnp.int32, (tq, tk), 1)
            bias = jnp.where(cols > rows, -jnp.inf, 0.0).astype(jnp.float32)
        elif has_mask:
            bias = mask_ref[...].astype(jnp.float32)
        elif t_pad != t_valid:          # mask out zero-padded KV positions
            cols = k0 + jax.lax.broadcasted_iota(jnp.int32, (tq, tk), 1)
            bias = jnp.where(cols >= t_valid, -jnp.inf, 0.0).astype(jnp.float32)

        # TODO(synk): for head_dim >= 128 this static unroll could become a
        # lax.fori_loop with pl.ds head slicing to further bound live ranges.
        for h in range(heads_per_grp):
            sl = slice(h * head_dim, (h + 1) * head_dim)
            qh, kh, vh = q[:, sl], k[:, sl], v[:, sl]
            # q k^T via dimension numbers (no materialized k transpose).
            s = jax.lax.dot_general(qh, kh, (((1,), (1,)), ((), ())),
                                    preferred_element_type=jnp.float32)  # (tq, tk)
            if bias is not None:
                s = s + bias
            m_prev = m_ref[h]                                            # (tq, 1)
            m_new = jnp.maximum(m_prev, jnp.max(s, axis=-1, keepdims=True))
            alpha = jnp.exp(m_prev - m_new)                              # (tq, 1)
            p = jnp.exp((s - m_new).astype(exp_dtype))                   # (tq, tk)
            l_ref[h] = alpha * l_ref[h] + jnp.sum(
                p.astype(jnp.float32), axis=-1, keepdims=True)
            pv = jnp.dot(p.astype(vh.dtype), vh,
                         preferred_element_type=jnp.float32)             # (tq, D)
            ctx_ref[:, sl] = alpha * ctx_ref[:, sl] + pv
            m_ref[h] = m_new

    if causal:
        # Skip KV tiles that lie entirely above the diagonal (~half the work
        # of a causal decoder).
        pl.when(k0 <= q0 + tq - 1)(compute)
    else:
        compute()

    # ---- finalize: normalize, project through this group's Wo rows ---------
    @pl.when(kv == n_kv - 1)
    def _():
        parts = []
        for h in range(heads_per_grp):
            sl = slice(h * head_dim, (h + 1) * head_dim)
            lh = l_ref[h]
            inv = pl.reciprocal(lh, approx=True) if approx_recip else 1.0 / lh
            parts.append(ctx_ref[:, sl] * inv)
        ctx = jnp.concatenate(parts, axis=-1).astype(wo_ref.dtype)   # (tq, gd) bf16
        # Grouped output projection: contraction depth gd (not D).
        acc_ref[...] += jnp.dot(ctx, wo_ref[...],
                                preferred_element_type=jnp.float32)  # (tq, C)

        @pl.when(g == n_g - 1)
        def _():
            o_ref[0] = (acc_ref[...] + bo_ref[...]).astype(o_ref.dtype)


# ----------------------------------------------------------------------------
# Parameter preparation (done once, not per forward call)
# ----------------------------------------------------------------------------
def _pick_heads_per_group(n_head, head_dim, max_group_width):
    """Largest head group whose lane width hb*D fits max_group_width (>= 1)."""
    best = 1
    for hb in range(1, n_head + 1):
        if n_head % hb == 0 and hb * head_dim <= max_group_width:
            best = hb
    return best


def prepare_params(params, n_head, *, max_group_width=256,
                   weight_dtype=jnp.bfloat16):
    """Pre-fuse / pre-scale / pre-split projection weights.

    PyTorch Linear stores weight as (out, in): y = x @ W.T + b.  The softmax
    scale (D**-0.25 on q and on k in the reference, i.e. D**-0.5 on the scores)
    is folded into the q projection exactly once.
    """
    C = params["wq"].shape[0]
    assert C % n_head == 0
    D = C // n_head
    hb = _pick_heads_per_group(n_head, D, max_group_width)
    G = n_head // hb
    gd = hb * D
    scale = float(D) ** (-0.5)

    wq_t = params["wq"].T.astype(jnp.float32) * scale     # (C, C)
    wk_t = params["wk"].T.astype(jnp.float32)
    wv_t = params["wv"].T.astype(jnp.float32)
    bq = params["bq"].astype(jnp.float32) * scale
    bv = params["bv"].astype(jnp.float32)
    zeros = jnp.zeros((gd,), jnp.float32)                  # key proj has no bias

    w_groups, b_groups = [], []
    for g in range(G):
        s = slice(g * gd, (g + 1) * gd)
        w_groups.append(jnp.concatenate([wq_t[:, s], wk_t[:, s], wv_t[:, s]], axis=1))
        b_groups.append(jnp.concatenate([bq[s], zeros, bv[s]]))

    return {
        "w_qkv": jnp.stack(w_groups).astype(weight_dtype),             # (G, C, 3gd)
        "b_qkv": jnp.stack(b_groups).reshape(G, 1, 3 * gd).astype(jnp.float32),
        "wo": params["wo"].T.astype(weight_dtype),                     # (C, C)
        "bo": params["bo"].reshape(1, C).astype(jnp.float32),
        "n_head": n_head, "heads_per_group": hb, "head_dim": D, "n_state": C,
    }


# ----------------------------------------------------------------------------
# Wrapper
# ----------------------------------------------------------------------------
def multi_head_attention(x, prepared, mask=None, causal=False, *,
                         block_t=None, approx_recip=False, exp_in_bf16=False):
    """Pallas forward of MultiHeadAttention (self-attention, kv_cache=None).

    `causal=True` builds the Whisper decoder mask in-kernel (with fully-masked
    KV-tile skipping); otherwise an explicit additive `mask` may be passed
    (mask[:T, :T] is used), matching the PyTorch module.
    """
    B, T, C = x.shape
    assert C == prepared["n_state"]
    n_head = prepared["n_head"]
    hb = prepared["heads_per_group"]
    D = prepared["head_dim"]
    gd = hb * D
    G = n_head // hb
    out_dtype = x.dtype

    # ---- tile / padding selection -------------------------------------------
    if block_t is None:
        block_t = 256 if T >= 256 else _round_up(max(T, 8), 8)
    assert block_t % 8 == 0
    t_pad = _round_up(T, block_t)
    n_t = t_pad // block_t

    has_mask = (mask is not None) and (not causal)
    if has_mask and n_t > 1:
        assert block_t % 128 == 0, "mask tile lane dim must be a multiple of 128"

    xp = x.astype(jnp.bfloat16)
    if t_pad != T:
        xp = jnp.pad(xp, ((0, 0), (0, t_pad - T), (0, 0)))

    # ---- kernel 1: fused QKV projection, head-group-major output ------------
    qkv_spec = pl.BlockSpec((1, 1, block_t, gd), lambda b, t, g: (b, g, t, 0))
    q, k, v = pl.pallas_call(
        functools.partial(_qkv_proj_kernel, gd=gd),
        out_shape=(jax.ShapeDtypeStruct((B, G, t_pad, gd), jnp.bfloat16),) * 3,
        grid=(B, n_t, G),
        in_specs=[pl.BlockSpec((1, block_t, C), lambda b, t, g: (b, t, 0)),
                  pl.BlockSpec((1, C, 3 * gd), lambda b, t, g: (g, 0, 0)),
                  pl.BlockSpec((1, 1, 3 * gd), lambda b, t, g: (g, 0, 0))],
        out_specs=(qkv_spec, qkv_spec, qkv_spec),
        compiler_params=pltpu.CompilerParams(
            dimension_semantics=("parallel", "parallel", "parallel"),
            vmem_limit_bytes=_VMEM_LIMIT),
    )(xp, prepared["w_qkv"], prepared["b_qkv"])

    # ---- kernel 2: flash attention fused with the output projection ---------
    q_spec = pl.BlockSpec((1, 1, block_t, gd), lambda b, qi, g, kv: (b, g, qi, 0))
    kv_spec = pl.BlockSpec((1, 1, block_t, gd), lambda b, qi, g, kv: (b, g, kv, 0))
    in_specs = [q_spec, kv_spec, kv_spec,
                pl.BlockSpec((gd, C), lambda b, qi, g, kv: (g, 0)),
                pl.BlockSpec((1, C), lambda b, qi, g, kv: (0, 0))]
    inputs = [q, k, v, prepared["wo"], prepared["bo"]]
    if has_mask:
        m = mask[:T, :T].astype(jnp.float32)
        if t_pad != T:
            # Padded key columns are fully masked; padded query rows are junk
            # (finite) and sliced off below.
            m = jnp.pad(m, ((0, 0), (0, t_pad - T)), constant_values=-jnp.inf)
            m = jnp.pad(m, ((0, t_pad - T), (0, 0)))
        in_specs.append(pl.BlockSpec((block_t, block_t),
                                     lambda b, qi, g, kv: (qi, kv)))
        inputs.append(m.astype(jnp.bfloat16))

    out = pl.pallas_call(
        functools.partial(
            _flash_attn_out_kernel, head_dim=D, heads_per_grp=hb,
            tq=block_t, tk=block_t, t_valid=T, t_pad=t_pad, causal=causal,
            has_mask=has_mask,
            exp_dtype=jnp.bfloat16 if exp_in_bf16 else jnp.float32,
            approx_recip=approx_recip),
        out_shape=jax.ShapeDtypeStruct((B, t_pad, C), out_dtype),
        grid=(B, n_t, G, n_t),
        in_specs=in_specs,
        out_specs=pl.BlockSpec((1, block_t, C), lambda b, qi, g, kv: (b, qi, 0)),
        scratch_shapes=[pltpu.VMEM((block_t, C), jnp.float32),    # out-proj acc
                        pltpu.VMEM((block_t, gd), jnp.float32),   # group ctx acc
                        pltpu.VMEM((hb, block_t, 1), jnp.float32),  # running max
                        pltpu.VMEM((hb, block_t, 1), jnp.float32)],  # running sum
        compiler_params=pltpu.CompilerParams(
            dimension_semantics=("parallel", "parallel", "arbitrary", "arbitrary"),
            vmem_limit_bytes=_VMEM_LIMIT),
    )(*inputs)

    return out[:, :T, :] if t_pad != T else out


# ----------------------------------------------------------------------------
# Pure-JAX reference (mirrors the PyTorch module exactly)
# ----------------------------------------------------------------------------
def _reference(x, params, n_head, mask=None):
    B, T, C = x.shape
    D = C // n_head
    scale = float(D) ** (-0.25)
    q = x @ params["wq"].T + params["bq"]
    k = x @ params["wk"].T
    v = x @ params["wv"].T + params["bv"]
    qh = q.reshape(B, T, n_head, D).transpose(0, 2, 1, 3) * scale
    kh = k.reshape(B, T, n_head, D).transpose(0, 2, 3, 1) * scale
    vh = v.reshape(B, T, n_head, D).transpose(0, 2, 1, 3)
    qk = qh @ kh
    if mask is not None:
        qk = qk + mask[:T, :T]
    w = jax.nn.softmax(qk.astype(jnp.float32), axis=-1).astype(q.dtype)
    wv = (w @ vh).transpose(0, 2, 1, 3).reshape(B, T, C)
    return wv @ params["wo"].T + params["bo"]


# ----------------------------------------------------------------------------
if __name__ == "__main__":
    key = jax.random.PRNGKey(0)
    ks = jax.random.split(key, 10)
    C, H = 32, 4                      # n_state, n_head  (head_dim = 8)
    s = 1.0 / (C ** 0.5)
    params = {
        "wq": jax.random.normal(ks[0], (C, C), jnp.float32) * s,
        "bq": jax.random.normal(ks[1], (C,), jnp.float32) * s,
        "wk": jax.random.normal(ks[2], (C, C), jnp.float32) * s,
        "wv": jax.random.normal(ks[3], (C, C), jnp.float32) * s,
        "bv": jax.random.normal(ks[4], (C,), jnp.float32) * s,
        "wo": jax.random.normal(ks[5], (C, C), jnp.float32) * s,
        "bo": jax.random.normal(ks[6], (C,), jnp.float32) * s,
    }

    # --- test 1: causal decoder path; multiple KV tiles and head groups ------
    B, T = 2, 16
    x = jax.random.normal(ks[7], (B, T, C), jnp.float32)
    prep = prepare_params(params, H, max_group_width=16)   # 2 heads / group
    out = jax.block_until_ready(
        multi_head_attention(x, prep, causal=True, block_t=8))
    causal_mask = jnp.triu(jnp.full((T, T), -jnp.inf, jnp.float32), k=1)
    ref = _reference(x, params, H, causal_mask)
    err = float(jnp.max(jnp.abs(out - ref)))
    assert out.shape == (B, T, C)
    assert jnp.allclose(out, ref, rtol=3e-2, atol=3e-2), f"causal max err {err}"

    # --- test 2: explicit additive mask; T not a multiple of the tile --------
    T2 = 12
    x2 = jax.random.normal(ks[8], (B, T2, C), jnp.float32)
    mask2 = jax.random.normal(ks[9], (T2, T2), jnp.float32)
    prep2 = prepare_params(params, H)                       # all heads, 1 group
    out2 = jax.block_until_ready(multi_head_attention(x2, prep2, mask=mask2))
    ref2 = _reference(x2, params, H, mask2)
    err2 = float(jnp.max(jnp.abs(out2 - ref2)))
    assert out2.shape == (B, T2, C)
    assert jnp.allclose(out2, ref2, rtol=3e-2, atol=3e-2), f"mask max err {err2}"

    print("KERNEL_OK")
</pallas_src>

<mosaic_0001>
module attributes {stable_mosaic.version = 11 : i64} {
  func.func @_qkv_proj_kernel(%arg0: i32, %arg1: i32, %arg2: i32, %arg3: memref<1x8x32xbf16, #tpu.memory_space<vmem>>, %arg4: memref<1x32x48xbf16, #tpu.memory_space<vmem>>, %arg5: memref<1x1x48xf32, #tpu.memory_space<vmem>>, %arg6: memref<1x1x8x16xbf16, #tpu.memory_space<vmem>>, %arg7: memref<1x1x8x16xbf16, #tpu.memory_space<vmem>>, %arg8: memref<1x1x8x16xbf16, #tpu.memory_space<vmem>>) attributes {dimension_semantics = [#tpu.dimension_semantics<parallel>, #tpu.dimension_semantics<parallel>, #tpu.dimension_semantics<parallel>], iteration_bounds = array<i64: 2, 2, 2>, scalar_prefetch = 0 : i64, scratch_operands = 0 : i64, tpu.core_type = #tpu.core_type<tc>, window_params = [{transform_indices = @transform_0, window_bounds = array<i64: 1, 8, 32>}, {transform_indices = @transform_1, window_bounds = array<i64: 1, 32, 48>}, {transform_indices = @transform_2, window_bounds = array<i64: 1, 1, 48>}, {transform_indices = @transform_3, window_bounds = array<i64: 1, 1, 8, 16>}, {transform_indices = @transform_4, window_bounds = array<i64: 1, 1, 8, 16>}, {transform_indices = @transform_5, window_bounds = array<i64: 1, 1, 8, 16>}]} {
    %c0 = arith.constant 0 : index
    %c0_0 = arith.constant 0 : index
    %c0_1 = arith.constant 0 : index
    %0 = vector.load %arg3[%c0, %c0_0, %c0_1] : memref<1x8x32xbf16, #tpu.memory_space<vmem>>, vector<1x8x32xbf16>
    %1 = vector.shape_cast %0 : vector<1x8x32xbf16> to vector<8x32xbf16>
    %c0_2 = arith.constant 0 : index
    %c0_3 = arith.constant 0 : index
    %c0_4 = arith.constant 0 : index
    %2 = vector.load %arg4[%c0_2, %c0_3, %c0_4] : memref<1x32x48xbf16, #tpu.memory_space<vmem>>, vector<1x32x48xbf16>
    %3 = vector.shape_cast %2 : vector<1x32x48xbf16> to vector<32x48xbf16>
    %cst = arith.constant dense<0.000000e+00> : vector<8x48xf32>
    %4 = tpu.matmul %1, %3, %cst {dimension_numbers = #tpu.dot_dimension_numbers<[1], [0], [0], [1], [0, 0, 1, 1], [], []>} : vector<8x32xbf16>, vector<32x48xbf16>, vector<8x48xf32> -> vector<8x48xf32>
    %c0_5 = arith.constant 0 : index
    %c0_6 = arith.constant 0 : index
    %c0_7 = arith.constant 0 : index
    %5 = vector.load %arg5[%c0_5, %c0_6, %c0_7] : memref<1x1x48xf32, #tpu.memory_space<vmem>>, vector<1x1x48xf32>
    %6 = vector.shape_cast %5 : vector<1x1x48xf32> to vector<1x48xf32>
    %7 = vector.broadcast %6 : vector<1x48xf32> to vector<8x48xf32>
    %8 = arith.addf %4, %7 : vector<8x48xf32>
    %9 = vector.extract_strided_slice %8 {offsets = [0, 0], sizes = [8, 16], strides = [1, 1]} : vector<8x48xf32> to vector<8x16xf32>
    %10 = arith.truncf %9 : vector<8x16xf32> to vector<8x16xbf16>
    %c0_8 = arith.constant 0 : index
    %c0_9 = arith.constant 0 : index
    %c0_10 = arith.constant 0 : index
    %c0_11 = arith.constant 0 : index
    %11 = vector.load %arg6[%c0_8, %c0_9, %c0_10, %c0_11] : memref<1x1x8x16xbf16, #tpu.memory_space<vmem>>, vector<1x1x8x16xbf16>
    %12 = vector.shape_cast %11 : vector<1x1x8x16xbf16> to vector<8x16xbf16>
    %13 = vector.shape_cast %10 : vector<8x16xbf16> to vector<1x1x8x16xbf16>
    tpu.vector_store %arg6[%c0_8, %c0_9, %c0_10, %c0_11], %13 {strides = array<i32>} : memref<1x1x8x16xbf16, #tpu.memory_space<vmem>>, vector<1x1x8x16xbf16>,
    %14 = vector.extract_strided_slice %8 {offsets = [0, 16], sizes = [8, 16], strides = [1, 1]} : vector<8x48xf32> to vector<8x16xf32>
    %15 = arith.truncf %14 : vector<8x16xf32> to vector<8x16xbf16>
    %c0_12 = arith.constant 0 : index
    %c0_13 = arith.constant 0 : index
    %c0_14 = arith.constant 0 : index
    %c0_15 = arith.constant 0 : index
    %16 = vector.load %arg7[%c0_12, %c0_13, %c0_14, %c0_15] : memref<1x1x8x16xbf16, #tpu.memory_space<vmem>>, vector<1x1x8x16xbf16>
    %17 = vector.shape_cast %16 : vector<1x1x8x16xbf16> to vector<8x16xbf16>
    %18 = vector.shape_cast %15 : vector<8x16xbf16> to vector<1x1x8x16xbf16>
    tpu.vector_store %arg7[%c0_12, %c0_13, %c0_14, %c0_15], %18 {strides = array<i32>} : memref<1x1x8x16xbf16, #tpu.memory_space<vmem>>, vector<1x1x8x16xbf16>,
    %19 = vector.extract_strided_slice %8 {offsets = [0, 32], sizes = [8, 16], strides = [1, 1]} : vector<8x48xf32> to vector<8x16xf32>
    %20 = arith.truncf %19 : vector<8x16xf32> to vector<8x16xbf16>
    %c0_16 = arith.constant 0 : index
    %c0_17 = arith.constant 0 : index
    %c0_18 = arith.constant 0 : index
    %c0_19 = arith.constant 0 : index
    %21 = vector.load %arg8[%c0_16, %c0_17, %c0_18, %c0_19] : memref<1x1x8x16xbf16, #tpu.memory_space<vmem>>, vector<1x1x8x16xbf16>
    %22 = vector.shape_cast %21 : vector<1x1x8x16xbf16> to vector<8x16xbf16>
    %23 = vector.shape_cast %20 : vector<8x16xbf16> to vector<1x1x8x16xbf16>
    tpu.vector_store %arg8[%c0_16, %c0_17, %c0_18, %c0_19], %23 {strides = array<i32>} : memref<1x1x8x16xbf16, #tpu.memory_space<vmem>>, vector<1x1x8x16xbf16>,
    return
  }
  func.func @transform_0(%arg0: i32, %arg1: i32, %arg2: i32) -> (i32, i32, i32) {
    %c0_i32 = arith.constant 0 : i32
    %c0_i32_0 = arith.constant 0 : i32
    return %arg0, %arg1, %c0_i32 : i32, i32, i32
  }
  func.func @transform_1(%arg0: i32, %arg1: i32, %arg2: i32) -> (i32, i32, i32) {
    %c0_i32 = arith.constant 0 : i32
    %c0_i32_0 = arith.constant 0 : i32
    %c0_i32_1 = arith.constant 0 : i32
    return %arg2, %c0_i32, %c0_i32_0 : i32, i32, i32
  }
  func.func @transform_2(%arg0: i32, %arg1: i32, %arg2: i32) -> (i32, i32, i32) {
    %c0_i32 = arith.constant 0 : i32
    %c0_i32_0 = arith.constant 0 : i32
    %c0_i32_1 = arith.constant 0 : i32
    return %arg2, %c0_i32, %c0_i32_0 : i32, i32, i32
  }
  func.func @transform_3(%arg0: i32, %arg1: i32, %arg2: i32) -> (i32, i32, i32, i32) {
    %c0_i32 = arith.constant 0 : i32
    %c0_i32_0 = arith.constant 0 : i32
    return %arg0, %arg2, %arg1, %c0_i32 : i32, i32, i32, i32
  }
  func.func @transform_4(%arg0: i32, %arg1: i32, %arg2: i32) -> (i32, i32, i32, i32) {
    %c0_i32 = arith.constant 0 : i32
    %c0_i32_0 = arith.constant 0 : i32
    return %arg0, %arg2, %arg1, %c0_i32 : i32, i32, i32, i32
  }
  func.func @transform_5(%arg0: i32, %arg1: i32, %arg2: i32) -> (i32, i32, i32, i32) {
    %c0_i32 = arith.constant 0 : i32
    %c0_i32_0 = arith.constant 0 : i32
    return %arg0, %arg2, %arg1, %c0_i32 : i32, i32, i32, i32
  }
}

</mosaic_0001>

<bundles_post_ra>
// kernel: tpu_custom_call.1
= control target key start
LH: loop header
LB: loop body
LE: loop exit
PB: predicated region body
PF: predicated region fallthrough
CT: control target
= control target key end

     0   :  { %s1593_s0 = inlined_call_operand.hbm [shape: bf16[2,16,32], index: 0, kind: input, shape index: {}]   ;;  %s1594_s1 = inlined_call_operand.hbm [shape: bf16[2,32,48], index: 1, kind: input, shape index: {}]   ;;  %s1595_s2 = inlined_call_operand.vmem [shape: f32[2,1,48], index: 2, kind: input, shape index: {}]   ;;  %s1596_s3 = inlined_call_operand.hbm [shape: bf16[2,2,16,16], index: 3, kind: output, shape index: {0}]   ;;  %s1597_s4 = inlined_call_operand.hbm [shape: bf16[2,2,16,16], index: 4, kind: output, shape index: {1}]   ;;  %s1598_s5 = inlined_call_operand.hbm [shape: bf16[2,2,16,16], index: 5, kind: output, shape index: {2}]  }
   0x1   :  { %1617 = sst [smem:[#allocation26_spill]] %s1593_s0 }
   0x2   :  { %1618 = sst [smem:[#allocation27_spill]] %s1594_s1 }
   0x3   :  { %1619 = sst [smem:[#allocation28_spill]] %s1595_s2 }
   0x4   :  { %1620 = sst [smem:[#allocation29_spill]] %s1596_s3 }
   0x5   :  { %1621 = sst [smem:[#allocation30_spill]] %s1597_s4 }
   0x6   :  { %1622 = sst [smem:[#allocation31_spill]] %s1598_s5 }
   0x7   :  { %11 = vsyncpa [#allocation3], 0 }
   0x8   :  { %13 = vsyncpa [#allocation3 + $0x1], 0 }
   0x9   :  { %14 = vsyncpa [#allocation6], 0 }
   0xa   :  { %16 = vsyncpa [#allocation6 + $0x1], 0 }
   0xb   :  { %17 = vsyncpa [#allocation4], 0 }
   0xc   :  { %19 = vsyncpa [#allocation4 + $0x1], 0 }
   0xd   :  { %20 = vsyncpa [#allocation9], 0 }
   0xe   :  { %22 = vsyncpa [#allocation9 + $0x1], 0  ;;  %s1218_s18 = smov 0   ;;  %s1220_s19 = smov 0  }
   0xf   :  { %s1222_s20 = smov 0   ;;  %s1224_s21 = smov 0  }
  0x10   :  { %s1226_s22 = smov 0   ;;  %s1228_s23 = smov 0  }
  0x11   :  { %s1230_s24 = smov 0   ;;  %s1232_s25 = smov 0  }
  0x12   :  { %s1234_s26 = smov 0   ;;  %s1236_s27 = smov 0  }
  0x13   :  { %s1238_s28 = smov 0   ;;  %s1240_s29 = smov 0  }
  0x14   :  { %s1242_s30 = smov 0   ;;  %s1244_s6 = smov 0  }
  0x15   :  { %s1246_s7 = smov 0   ;;  %s1248_s8 = smov 0  }
  0x16 LB: > { %1623 = sst [smem:[#allocation15_spill]] %s1115_s18  ;;  %s1295_s9 = sadd.s32 4294967295, %s1175_s8   ;;  %s1175_s8 = sphi %s1248_s8, %s28_s8   ;;  %s1171_s7 = sphi %s1246_s7, %s1678_s7   ;;  %s1167_s6 = sphi %s1244_s6, %s1677_s6   ;;  %s1163_s30 = sphi %s1242_s30, %s1665_s30   ;;  %s1159_s29 = sphi %s1240_s29, %s1676_s29   ;;  %s1155_s28 = sphi %s1238_s28, %s1664_s28   ;;  %s1151_s27 = sphi %s1236_s27, %s1663_s27   ;;  %s1147_s26 = sphi %s1234_s26, %s1675_s26   ;;  %s1143_s25 = sphi %s1232_s25, %s1674_s25   ;;  %s1139_s24 = sphi %s1230_s24, %s1673_s24   ;;  %s1135_s23 = sphi %s1228_s23, %s1672_s23   ;;  %s1131_s22 = sphi %s1226_s22, %s1671_s22   ;;  %s1127_s21 = sphi %s1224_s21, %s1670_s21   ;;  %s1123_s20 = sphi %s1222_s20, %s1669_s20   ;;  %s1119_s19 = sphi %s1220_s19, %s1668_s19   ;;  %s1115_s18 = sphi %s1218_s18, %s1667_s18  }
  0x17   : > { %1624 = sst [smem:[#allocation16_spill]] %s1159_s29  ;;  %s1604_s10 = sadd.s32 4294967294, %s1175_s8  }
  0x18   : > { %1625 = sst [smem:[#allocation17_spill]] %s1163_s30  ;;  %p63_p0 = scmp.ne.s32.totalorder %s1147_s26, %s1143_s25 }
  0x19   : > { %1626 = sst [smem:[#allocation18_spill]] %s1167_s6  ;;  %p64_p1 = scmp.eq.s32.totalorder %s1175_s8, 0 }
  0x1a   : > { %1627 = sst [smem:[#allocation19_spill]] %s1175_s8  ;;  %p69_p2 = scmp.ne.s32.totalorder %s1143_s25, %s1139_s24 }
  0x1b   : > { %1628 = sst [smem:[#allocation20_spill]] %s1295_s9  ;;  %p70_p3 = scmp.eq.s32.totalorder %s1295_s9, 0 }
  0x1c   : > { %p89_p4 = scmp.ne.s32.totalorder %s1135_s23, %s1131_s22  ;;  %p1305_p5 = por %p64_p1, %p63_p0 }
  0x1d   : > { %p95_p6 = scmp.ne.s32.totalorder %s1131_s22, %s1127_s21  ;;  %p1310_p7 = por %p70_p3, %p69_p2 }
  0x1e   : > { %p1314_p8 = por %p89_p4, %p64_p1  ;;  %p148_p10 = scmp.ne.s32.totalorder %s1123_s20, %s1119_s19 }
  0x1f   : > { %p1318_p9 = por %p95_p6, %p70_p3  ;;  %p149_p11 = scmp.eq.s32.totalorder %s1295_s9, 7 }
  0x20   : > { %p154_p12 = scmp.ne.s32.totalorder %s1119_s19, %s1115_s18  ;;  %p155_p13 = scmp.eq.s32.totalorder %s1604_s10, 7 }
  0x21   : > { %s1632_s14 = scalar_select %p1318_p9, 1, 0 }
  0x22   : > { %p1329_p0 = por %p149_p11, %p148_p10  ;;  %p761_p1 = scmp.lt.s32.totalorder %s1175_s8, 8 }
  0x23   : > { %p1334_p2 = por %p155_p13, %p154_p12  ;;  %s235_s17 = sand.u32 1, %s1147_s26  }
  0x24   : > { %s1633_s15 = scalar_select %p1329_p0, 1, 0 }
  0x25   : > { %s1635_s16 = scalar_select %p1334_p2, 1, 0 }
  0x26   : > { %1634 = sst [smem:[#allocation21_spill]] %s1633_s15  ;;  %s690_s21 = sshll.u32 %s235_s17, 2 }
  0x27   : > { %1636 = sst [smem:[#allocation22_spill]] %s1635_s16  ;;  %s691_s24 = sshll.u32 %s1171_s7, 1 }
  0x28   : > { %s244_s5 = sadd.s32 %s1167_s6, %s691_s24  ;;  %s239_s4 = scalar_lea.vmem [#allocation2], %s690_s21 }
  0x29   : > { %s248_s9 = sshll.u32 %s239_s4, 4  ;;  %s692_s18 = sshll.u32 %s244_s5, 6  ;;  %s249_s9 = int_to_ptr.vmem [resolvable:$true] %s248_s9 }
  0x2a   : > { %s1637_s0 = sld [smem:[#allocation26_spill]]  ;;  %p1346_p3 = pnand %p761_p1, %p1305_p5 }
  0x2b   : > { %p1352_p4 = pnand %p761_p1, %p1314_p8  ;;  %p696_p6 = scmp.ge.s32.totalorder %s1175_s8, 1 }
  0x2c   : > { %p280_p10 = scmp.lt.s32.totalorder %s1175_s8, 9  ;;  %s236_s4 = scalar_lea.sflag [#allocation3], %s235_s17 }
  0x2d   : > { %p901_p11 = pneg %p1346_p3  ;;  %s912_s5 = scalar_lea.vmem %s249_s9, 64 }
  0x2e   : > { %p913_p12 = scmp.ne.s32.totalorder %s249_s9, %s912_s5  ;;  %s1177_s3 = smov [#allocation2]  }
  0x30   : > { %s246_s2 = scalar_lea.hbm %s1637_s0, %s692_s18  ;;  %p915_p13 = pnand %p913_p12, %p901_p11 }
  0x31   : > { %s917_s18 = sshll.u32 %s1177_s3, 4  ;;  %s918_s18 = int_to_ptr.vmem [resolvable:$false] %s917_s18 }
  0x32   : > { %p916_p2 = pneg %p915_p13  ;;  %s919_s10 = scalar_lea.vmem %s918_s18, 128 }
  0x33   : > { %p920_p5 = scmp.lt.s32.totalorder %s249_s9, %s918_s18  ;;  %p921_p0 = scmp.lt.s32.totalorder %s919_s10, %s912_s5 }
  0x35   : > { %p922_p9 = por %p921_p0, %p920_p5 }
  0x37   : > { %p923_p8 = pnand %p922_p9, %p916_p2 }
  0x39   : > { %926 = shalt.err (!%p923_p8)
}
  0x3a   : > { %747 = dma.hbm_to_vmem [thread:$0]  (!%p1346_p3), %s246_s2, 64, %s249_s9, %s236_s4  }
  0x3b   : > { %p1366_p0 = pnand %p696_p6, %p280_p10  ;;  %s43_s13 = sadd.s32 1, %s1167_s6 }
  0x3c   : > { %s47_s15 = sadd.s32 1, %s1171_s7  ;;  %s40_s17 = sadd.s32 1, %s1163_s30 }
  0x3d   : > { %s1610_s21 = sand.u32 1, %s1135_s23   ;;  %s56_s24 = sadd.s32 1, %s1147_s26 }
  0x3e   : > { %p41_p9 = scmp.ge.s32.totalorder %s40_s17, 2  ;;  %s82_s5 = sadd.s32 1, %s1135_s23 }
  0x3f   : > { %s693_s3 = sshll.u32 %s1610_s21, 4  ;;  %s138_s2 = sadd.s32 1, %s1123_s20 }
  0x40   : > { %s1680_s17 = smov (%p41_p9, %s40_s17), 0  ;;  %s1682_s13 = smov (!%p41_p9, %s43_s13), %s1167_s6 }
  0x41   : > { %1641 = sst [smem:[#allocation23_spill]] %s1680_s17  ;;  %p45_p1 = scmp.ge.s32.totalorder %s1682_s13, 2 }
  0x42   : > { %s79_s9 = ssub.s32 %s1163_s30, %s1680_s17  ;;  %s721_s4 = sshll.u32 %s1163_s30, 8 }
  0x43   : > { %p80_p2 = scmp.eq.s32.totalorder %s79_s9, 0  ;;  %s1684_s13 = smov (%p45_p1, %s1682_s13), 0 }
  0x44   : > { %1642 = sst [smem:[#allocation24_spill]] %s1684_s13  ;;  %s1686_s15 = smov (!%p45_p1, %s47_s15), %s1171_s7 }
  0x45   : > { %s259_s18 = scalar_lea.vmem [#allocation5], %s693_s3  ;;  %p49_p3 = scmp.ge.s32.totalorder %s1686_s15, 2 }
  0x46   : > { %s266_s10 = sshll.u32 %s259_s18, 4  ;;  %s52_s21 = ssub.s32 %s1167_s6, %s1684_s13  ;;  %s1400_s10 = int_to_ptr.vmem [resolvable:$true] %s266_s10 }
  0x47   : > { %s1391_s0 = scalar_select %p80_p2, %s1135_s23, %s82_s5  }
  0x48   : > { %s1688_s15 = smov (%p49_p3, %s1686_s15), 0  ;;  %s1644_s1 = sld [smem:[#allocation27_spill]] }
  0x49   : > { %1643 = sst [smem:[#allocation25_spill]] %s1391_s0  ;;  %s51_s3 = ssub.s32 %s1171_s7, %s1688_s15 }
  0x4a   : > { %s53_s30 = sor.u32 %s52_s21, %s51_s3  ;;  %s133_s18 = sor.u32 %s79_s9, %s51_s3 }
  0x4b   : > { %p54_p6 = scmp.eq.s32.totalorder %s53_s30, 0  ;;  %s135_s13 = sor.u32 %s133_s18, %s52_s21 }
  0x4c   : > { %p136_p10 = scmp.eq.s32.totalorder %s135_s13, 0  ;;  %s1645_s0 = sand.u32 1, %s1135_s23  }
  0x4d   : > { %s1405_s5 = scalar_select %p54_p6, %s1147_s26, %s56_s24  }
  0x4e   : > { %s1398_s29 = scalar_lea.hbm %s1644_s1, %s721_s4  ;;  %s256_s8 = scalar_lea.sflag [#allocation6], %s1645_s0 }
  0x4f   : > { %s1408_s6 = scalar_select %p136_p10, %s1123_s20, %s138_s2  }
  0x50   : > { %p929_p11 = pneg %p1352_p4  ;;  %s940_s17 = scalar_lea.vmem %s1400_s10, 256 }
  0x51   : > { %p941_p12 = scmp.ne.s32.totalorder %s1400_s10, %s940_s17  ;;  %s1178_s4 = smov [#allocation5]  }
  0x52   : > { %s945_s1 = sshll.u32 %s1178_s4, 4  ;;  %s946_s1 = int_to_ptr.vmem [resolvable:$false] %s945_s1 }
  0x53   : > { %p943_p13 = pnand %p941_p12, %p929_p11  ;;  %s947_s9 = scalar_lea.vmem %s946_s1, 512 }
  0x54   : > { %p948_p8 = scmp.lt.s32.totalorder %s1400_s10, %s946_s1  ;;  %p949_p9 = scmp.lt.s32.totalorder %s947_s9, %s940_s17 }
  0x55   : > { %p944_p5 = pneg %p943_p13 }
  0x56   : > { %p950_p1 = por %p949_p9, %p948_p8 }
  0x58   : > { %p951_p2 = pnand %p950_p1, %p944_p5 }
  0x5a   : > { %954 = shalt.err (!%p951_p2)
}
  0x5b   : > { %s1179_s30 = smov 64   ;;  %s1180_s0 = smov 4  }
  0x5c   : > { %750 = dma.hbm_to_vmem [thread:$0]  (!%p1352_p4), %s1398_s29, 256, %s1400_s10, %s256_s8, %s1179_s30, %s1179_s30, %s1180_s0  }
  0x5d   : > { %284 = sbr.rel (%p1366_p0) target bundleno = 459 (0x1cb), region = 32  ;;  %s286_s13 = sand.u32 (!%p1366_p0), 1, %s1143_s25  }
  0x5e   : > { %s697_s21 = sshll.u32 (!%p1366_p0), %s286_s13, 2  ;;  %s287_s24 = scalar_lea.sflag (!%p1366_p0), [#allocation3], %s286_s13 }
  0x5f   : > { %s290_s1 = scalar_lea.vmem (!%p1366_p0), [#allocation2], %s697_s21 }
  0x62   : > { %1098 = dma.done.wait (%p1310_p7), %s287_s24, 64  }
  0x63   : > { %1100 = vsyncadd (%p1310_p7), %s287_s24, 4294967232  ;;  %s295_s2 = sand.u32 1, %s1131_s22   ;;  %p1646_p4 = scmp.ne.s32.totalorder %s1632_s14, 0 }
  0x64   : > { %s698_s3 = sshll.u32 %s295_s2, 4  ;;  %s296_s16 = scalar_lea.sflag [#allocation6], %s295_s2 }
  0x65   : > { %s299_s29 = scalar_lea.vmem [#allocation5], %s698_s3 }
  0x66   : > { %1102 = dma.done.wait (%p1646_p4), %s296_s16, 256  }
  0x67   : > { %1104 = vsyncadd (%p1646_p4), %s296_s16, 4294967040  ;;  %v1181_v0 = vmov 0.0   ;;  %s1647_s12 = sld [smem:[#allocation16_spill]]  ;;  %vm1182_vm0 = vmmov 0   ;;  %v897_v1 = vld [vmem:[%s299_s29 + $0x8] sm:$0xff]   ;;  %v898_v2 = vld [vmem:[%s299_s29] sm:$0xff]  }
  0x68   : > { %726 = vmatprep.subr.bf16.mxu0 %v1181_v0  ;;  %730 = vmatprep.mubr.msk.bf16.mxu0 %vm1182_vm0, %v1181_v0  ;;  %v348_v3 = vld [vmem:[%s290_s1] sm:$0xf]  ;;  %vm372_vm1 = vcmask 261120   ;;  %p344_p7 = scmp.lt.s32.totalorder %s1151_s27, 1  ;;  %s710_s11 = sshll.u32 %s1151_s27, 1  ;;  %vm417_vm2 = vcmask 125952  }
  0x69   : > { %727 = vmatpush3.bf16.msra.mxu0 %v897_v1  ;;  %s327_s10 = sand.u32 1, %s1119_s19   ;;  %s452_s18 = sadd.s32 %s1155_s28, %s710_s11 }
  0x6a   : > { %728 = vmatprep.subr.bf16.mxu0 %v1181_v0  ;;  %s345_s14 = scalar_select %p344_p7, %s1151_s27, 1 }
  0x6b   : > { %s1648_s9 = sld [smem:[#allocation28_spill]]  ;;  %s1442_s0 = sshll.u32 %s327_s10, 2 }
  0x6c   : > { %s329_s24 = scalar_lea.vmem [#allocation7], %s1442_s0  ;;  %s1649_s1 = sld [smem:[#allocation21_spill]] }
  0x6d   : > { %729 = vmatpush3.bf16.msra.mxu0 %v898_v2  ;;  %s711_s8 = sshll.u32 %s1647_s12, 2  ;;  %s458_s2 = sshll.u32 %s329_s24, 4  ;;  %s1453_s2 = int_to_ptr.vmem [resolvable:$true] %s458_s2 }
  0x6e   : > { %s454_s13 = sadd.s32 %s711_s8, %s452_s18  ;;  %s1650_s3 = sld [smem:[#allocation29_spill]] }
  0x6f   : > { %s1444_s21 = sshll.u32 %s454_s13, 6  ;;  %s1183_s29 = smov 112  }
  0x70   : > { %731 = vmatmul.mubr.msk.bf16.vlgmr.msra.gmra.mxu0 %vm372_vm1, %v348_v3  ;;  %s431_s12 = scalar_lea.sflag [#allocation4], %s327_s10  ;;  %s1184_s11 = smov [#allocation7]  }
  0x71   : > { %s346_s30 = scalar_lea.vmem %s1648_s9, %s345_s14  ;;  %s955_s14 = scalar_lea.vmem %s1453_s2, 64 }
  0x72   : > { %v702_v4 = vld [vmem:[%s346_s30] ss:$0 sm:$0xff]  ;;  %p956_p0 = scmp.ne.s32.totalorder %s1453_s2, %s955_s14  ;;  %p1651_p3 = scmp.ne.s32.totalorder %s1649_s1, 0 }
  0x73   : > { %s959_s18 = sshll.u32 %s1184_s11, 4  ;;  %s960_s18 = int_to_ptr.vmem [resolvable:$false] %s959_s18 }
  0x74   : > { %s1451_s16 = scalar_lea.hbm %s1650_s3, %s1444_s21  ;;  %p957_p6 = pnand %p956_p0, %p1651_p3 }
  0x75   : > { %s961_s8 = scalar_lea.vmem %s960_s18, 128  ;;  %p962_p11 = scmp.lt.s32.totalorder %s1453_s2, %s960_s18 }
  0x76   : > { %p958_p10 = pneg %p957_p6  ;;  %p963_p12 = scmp.lt.s32.totalorder %s961_s8, %s955_s14 }
  0x78   : > { %p964_p13 = por %p963_p12, %p962_p11 }
  0x7a   : > { %p965_p5 = pnand %p964_p13, %p958_p10 }
 0x130   : > { %v410_v5 = vpop.f32.mrf.mxu0 }
 0x131   : > { %v411_v6 = vadd.f32 %v702_v4, %v410_v5 }
 0x132   : > { %v732_v7 = vpop.f32.mrf.mxu0 }
 0x133   : > { %v416_v8 = vpack.c.bf16 %v411_v6, %v411_v6 }
 0x134   : > { %v413_v9 = vpop.f32.mrf.mxu0 }
 0x135   : > { %422 = vrot.lane.b32.xlu0 %v416_v8, %s1183_s29  ;;  %418 = vst.msk [vmem:[%s329_s24] sm:$0xf] %vm417_vm2, %v416_v8 }
 0x136   : > { %v733_v10 = vpop.f32.mrf.mxu0 }
 0x137   : > { %968 = shalt.err (!%p965_p5)
}
 0x138   : > { %s969_s17 = scalar_lea.hbm %s1451_s16, 64  ;;  %s973_s9 = scalar_lea.hbm %s1650_s3, 512 }
 0x139   : > { %p970_p8 = scmp.ne.s32.totalorder %s1451_s16, %s969_s17  ;;  %p974_p2 = scmp.lt.s32.totalorder %s1451_s16, %s1650_s3 }
 0x13a   : > { %p975_p4 = scmp.lt.s32.totalorder %s973_s9, %s969_s17 }
 0x13b   : > { %p971_p9 = pnand %p970_p8, %p1651_p3 }
 0x13c   : > { %p976_p7 = por %p975_p4, %p974_p2 }
 0x13d   : > { %p972_p1 = pneg %p971_p9 }
 0x13f   : > { %p977_p0 = pnand %p976_p7, %p972_p1 }
 0x141   : > { %980 = shalt.err (!%p977_p0)
}
 0x142   : > { %s1652_s24 = sld [smem:[#allocation20_spill]]  ;;  %s1185_s27 = smov 96  }
 0x143   : > { %738 = dma.vmem_to_hbm [thread:$0]  (%p1651_p3), %s1453_s2, 64, %s1451_s16, %s431_s12   ;;  %426 = vrot.lane.b32.xlu0 %v416_v8, %s1185_s27 }
 0x144   : > { %s336_s29 = scalar_lea.vmem [#allocation8], %s1442_s0  ;;  %s1653_s8 = sld [smem:[#allocation30_spill]] }
 0x145   : > { %s475_s14 = sshll.u32 %s336_s29, 4  ;;  %s343_s4 = scalar_lea.vmem [#allocation10], %s1442_s0  ;;  %s1484_s14 = int_to_ptr.vmem [resolvable:$true] %s475_s14 }
 0x146   : > { %s492_s9 = sshll.u32 %s343_s4, 4  ;;  %s981_s16 = scalar_lea.vmem %s1484_s14, 64  ;;  %s493_s9 = int_to_ptr.vmem [resolvable:$true] %s492_s9 }
 0x147   : > { %p982_p6 = scmp.ne.s32.totalorder %s1484_s14, %s981_s16  ;;  %s1186_s12 = smov [#allocation8]  }
 0x148   : > { %s435_s28 = sand.u32 1, %s1652_s24   ;;  %s985_s30 = sshll.u32 %s1186_s12, 4  ;;  %s986_s30 = int_to_ptr.vmem [resolvable:$false] %s985_s30 }
 0x149   : > { %s1490_s2 = scalar_lea.sflag [#allocation9], %s435_s28  ;;  %p983_p10 = pnand %p982_p6, %p1651_p3 }
 0x14a   : > { %s1654_s17 = smov %s1653_s8  ;;  %s1482_s10 = scalar_lea.hbm %s1653_s8, %s1444_s21 }
 0x14b   : > { %p984_p11 = pneg %p983_p10  ;;  %s987_s13 = scalar_lea.vmem %s986_s30, 128 }
 0x14c   : > { %p988_p12 = scmp.lt.s32.totalorder %s1484_s14, %s986_s30  ;;  %p989_p13 = scmp.lt.s32.totalorder %s987_s13, %s981_s16 }
 0x14e   : > { %p990_p5 = por %p989_p13, %p988_p12 }
 0x150   : > { %p991_p8 = pnand %p990_p5, %p984_p11 }
 0x1a7   : > { %v423_v11 = vpop.permute.xlu0 %422 }
 0x1a8   : > { %425 = vst.msk [vmem:[%s336_s29] sm:$0xf] %vm417_vm2, %v423_v11 }
 0x1a9   : > { %994 = shalt.err (!%p991_p8)
}
 0x1aa   : > { %s995_s24 = scalar_lea.hbm %s1482_s10, 64  ;;  %s999_s29 = scalar_lea.hbm %s1654_s17, 512 }
 0x1ab   : > { %p996_p9 = scmp.ne.s32.totalorder %s1482_s10, %s995_s24  ;;  %p1000_p4 = scmp.lt.s32.totalorder %s1482_s10, %s1654_s17 }
 0x1ac   : > { %p1001_p7 = scmp.lt.s32.totalorder %s999_s29, %s995_s24 }
 0x1ad   : > { %p997_p1 = pnand %p996_p9, %p1651_p3 }
 0x1ae   : > { %p1002_p0 = por %p1001_p7, %p1000_p4 }
 0x1af   : > { %p998_p2 = pneg %p997_p1 }
 0x1b1   : > { %p1003_p6 = pnand %p1002_p0, %p998_p2 }
 0x1b3   : > { %1006 = shalt.err (!%p1003_p6)
}
 0x1b4   : > { %739 = dma.vmem_to_hbm [thread:$0]  (%p1651_p3), %s1484_s14, 64, %s1482_s10, %s1490_s2  }
 0x1b5   : > { %s1655_s12 = sld [smem:[#allocation31_spill]]  ;;  %v427_v12 = vpop.permute.xlu0 %426  ;;  %s1007_s13 = scalar_lea.vmem %s493_s9, 64 }
 0x1b6   : > { %429 = vst.msk [vmem:[%s343_s4] sm:$0xf] %vm417_vm2, %v427_v12  ;;  %p1008_p10 = scmp.ne.s32.totalorder %s493_s9, %s1007_s13  ;;  %s1187_s24 = smov [#allocation10]  }
 0x1b7   : > { %s1011_s27 = sshll.u32 %s1187_s24, 4  ;;  %s1012_s27 = int_to_ptr.vmem [resolvable:$false] %s1011_s27 }
 0x1b8   : > { %p1009_p11 = pnand %p1008_p10, %p1651_p3  ;;  %s1013_s28 = scalar_lea.vmem %s1012_s27, 128 }
 0x1b9   : > { %p1014_p13 = scmp.lt.s32.totalorder %s493_s9, %s1012_s27  ;;  %p1015_p5 = scmp.lt.s32.totalorder %s1013_s28, %s1007_s13 }
 0x1ba   : > { %p1010_p12 = pneg %p1009_p11 }
 0x1bb   : > { %s490_s30 = scalar_lea.hbm %s1655_s12, %s1444_s21  ;;  %p1016_p8 = por %p1015_p5, %p1014_p13 }
 0x1bd   : > { %p1017_p9 = pnand %p1016_p8, %p1010_p12 }
 0x1bf   : > { %1020 = shalt.err (!%p1017_p9)
}
 0x1c0   : > { %s1021_s21 = scalar_lea.hbm %s490_s30, 64  ;;  %s1025_s10 = scalar_lea.hbm %s1655_s12, 512 }
 0x1c1   : > { %p1022_p1 = scmp.ne.s32.totalorder %s490_s30, %s1021_s21  ;;  %p1026_p7 = scmp.lt.s32.totalorder %s490_s30, %s1655_s12 }
 0x1c2   : > { %p1027_p0 = scmp.lt.s32.totalorder %s1025_s10, %s1021_s21 }
 0x1c3   : > { %p1023_p2 = pnand %p1022_p1, %p1651_p3 }
 0x1c4   : > { %p1028_p6 = por %p1027_p0, %p1026_p7 }
 0x1c5   : > { %p1024_p4 = pneg %p1023_p2 }
 0x1c7   : > { %p1029_p10 = pnand %p1028_p6, %p1024_p4 }
 0x1c9   : > { %1032 = shalt.err (!%p1029_p10)
}
 0x1ca   : > { %740 = dma.vmem_to_hbm [thread:$0]  (%p1651_p3), %s493_s9, 64, %s490_s30, %s1490_s2  }
 0x1cb PF: > { %s1656_s11 = sld [smem:[#allocation19_spill]] }
 0x1cc   : > { %s1657_s18 = sld [smem:[#allocation15_spill]] }
 0x1cd   : > { %s1658_s8 = sld [smem:[#allocation22_spill]] }
 0x1d1   : > { %p762_p11 = scmp.ge.s32.totalorder %s1656_s11, 2 }
 0x1d2   : > { %s504_s16 = sand.u32 1, %s1657_s18  }
 0x1d3   : > { %p1659_p12 = scmp.ne.s32.totalorder %s1658_s8, 0  ;;  %s505_s13 = scalar_lea.sflag [#allocation4], %s504_s16 }
 0x1d5   : > { %p752_p13 = pnand %p762_p11, %p1659_p12 }
 0x1d7   : > { %p753_p5 = pneg %p752_p13 }
 0x1d9   : > { %1106 = dma.done.wait (%p753_p5), %s505_s13, 64  }
 0x1da   : > { %1108 = vsyncadd (%p753_p5), %s505_s13, 4294967232  ;;  %s1660_s24 = sadd.s32 4294967294, %s1656_s11  }
 0x1db   : > { %s513_s27 = sand.u32 1, %s1660_s24  }
 0x1dc   : > { %s514_s28 = scalar_lea.sflag [#allocation9], %s513_s27 }
 0x1dd   : > { %1110 = dma.done.wait (%p753_p5), %s514_s28, 128  }
 0x1de   : > { %1112 = vsyncadd (%p753_p5), %s514_s28, 4294967168  ;;  %s28_s8 = sadd.s32 1, %s1656_s11   ;;  %s1662_s9 = sld [smem:[#allocation25_spill]] }
 0x1df   : > { %p1540_p3 = scmp.ge.s32.totalorder %s28_s8, 10   ;;  %s1663_s27 = sld [smem:[#allocation17_spill]] }
 0x1e0   : > { %s1664_s28 = sld [smem:[#allocation18_spill]]  ;;  %s1667_s18 = smov %s1119_s19 }
 0x1e1   : > { %s1665_s30 = sld [smem:[#allocation23_spill]]  ;;  %s1668_s19 = smov %s1123_s20 }
 0x1e2   : > { %s1666_s2 = sld [smem:[#allocation24_spill]]  ;;  %s1669_s20 = smov %s1408_s6 }
 0x1e3   : > { %s1670_s21 = smov %s1131_s22  ;;  %s1671_s22 = smov %s1135_s23 }
 0x1e4   : > { %s1672_s23 = smov %s1662_s9  ;;  %s1673_s24 = smov %s1143_s25 }
 0x1e5   : > { %s1674_s25 = smov %s1147_s26  ;;  %s1675_s26 = smov %s1405_s5 }
 0x1e6   : > { %s1676_s29 = smov %s1171_s7  ;;  %s1678_s7 = smov %s1688_s15 }
 0x1e7   :  { %27 = sbr.rel (!%p1540_p3) target bundleno = 22 (0x16), region = 125 }
 0x1e8   : > { %s1677_s6 = smov %s1666_s2 }
 0x1ec   :  { %528 = vsyncpa [#allocation3], 1 }
 0x1ed   :  { %530 = vsyncpa [#allocation3 + $0x1], 1 }
 0x1ee   :  { %531 = vsyncpa [#allocation6], 1 }
 0x1ef   :  { %533 = vsyncpa [#allocation6 + $0x1], 1 }
 0x1f0   :  { %534 = vsyncpa [#allocation4], 1 }
 0x1f1   :  { %536 = vsyncpa [#allocation4 + $0x1], 1 }
 0x1f2   :  { %537 = vsyncpa [#allocation9], 1 }
 0x1f3   :  { %539 = vsyncpa [#allocation9 + $0x1], 1 }

</bundles_post_ra>
